<compile_context>
chip_gen: v6e
topology: v6e:2x2x1
jax: 0.10.0
libtpu: 0.0.40
codegen_flags: <defaults>
</compile_context>

<pallas_src>
import numpy as np
import jax
import jax.numpy as jnp
from jax.experimental import pallas as pl
from jax.experimental.pallas import tpu as pltpu


# ----------------------------- config (small, synthetic) -----------------------------
CONFIG = {
    "model": {
        "timeemb": 16,       # d_model for sinusoidal time embedding (even)
        "featureemb": 8,
        "dowemb": 4,
        "todemb": 4,
        "toddim": 24,
        "sampling_shrink_interval": 1,
        "missing_rate": 0.25,
    },
    "diffusion": {
        "num_steps": 8,
        "schedule": "quad",
        "beta_start": 1e-4,
        "beta_end": 0.5,
    },
}
B, K, L = 2, 4, 16          # batch, spatial features, sequence length
N = B * K * L               # 128 flattened points -> exactly one full lane dimension
HIDDEN = 32                 # hidden width of the stand-in predictor
TIME_EMB = CONFIG["model"]["timeemb"]
HALF = TIME_EMB // 2        # 8
FEAT_E = CONFIG["model"]["featureemb"]
DOW_E = CONFIG["model"]["dowemb"]
TOD_E = CONFIG["model"]["todemb"]
NUM_STEPS = CONFIG["diffusion"]["num_steps"]

# packed-slab layout constants
FS_USED = DOW_E + TOD_E + FEAT_E + K + B + 1   # dow, tod, feat-emb, spa, one-hot(b), ones
FS = 32                                        # static feature slab rows (padded, mult of 8)
WCOLS = 128                                    # packed weight slab lane width
COL_STATIC = TIME_EMB                          # 16: static-channel weight columns start
COL_IN = TIME_EMB + FS                         # 48: w_in columns (2)
COL_MASK = COL_IN + 2                          # 50: w_mask column (1)
_NEG2LOG1E4 = -2.0 * float(np.log(10000.0)) / TIME_EMB


def _vmem():
    return pl.BlockSpec(memory_space=pltpu.MemorySpace.VMEM)


def _smem():
    return pl.BlockSpec(memory_space=pltpu.MemorySpace.SMEM)


# ----------------------------------- fused kernel -----------------------------------
def _fused_loss_kernel(b2_ref, rows_ref, feat_ref, wpack_ref, out_ref):
    """Fuses: diffusion forward noising, sinusoidal time embedding, stand-in noise
    predictor, and the masked-MSE loss reduction.  All inputs arrive as 3 packed
    VMEM slabs + 1 SMEM scalar; the two loss sums go to SMEM."""
    f32 = jnp.float32

    # (8, N) per-point slab — static row views (zero cost)
    obs = rows_ref[0:1, :]
    mm = rows_ref[1:2, :]
    am = rows_ref[2:3, :]
    eps = rows_ref[3:4, :]
    ts = rows_ref[4:5, :]
    sqa = rows_ref[5:6, :]          # lane-dense sqrt(alpha_hat[t[b]])
    sqb = rows_ref[6:7, :]          # lane-dense sqrt(1 - alpha_hat[t[b]])
    w2_row = rows_ref[7:8, 0:HIDDEN]  # final projection vector, (1, HIDDEN)

    # ---- diffusion forward noising + diffusion-model input channels ----
    noisy = sqa * obs + sqb * eps
    cond_obs = mm * obs                 # total_input channel 0: missing_mask * observed
    noisy_tgt = (1.0 - mm) * noisy      # total_input channel 1: (1 - mask) * noisy

    # ---- stand-in noise predictor ----
    # TODO(synk): diff_CDI is not defined in the reference source; this is a minimal
    # stand-in noise predictor (1x1-conv MLP over the concatenated channels plus a
    # diffusion-step embedding), not the real diff_CDI network.
    w = wpack_ref[...]                  # (HIDDEN, 128) packed weights

    # three per-point channels as rank-1 broadcast FMAs (cheap on VPU)
    h = (w[:, COL_IN:COL_IN + 1] * cond_obs
         + w[:, COL_IN + 1:COL_IN + 2] * noisy_tgt
         + w[:, COL_MASK:COL_MASK + 1] * mm)

    # Sinusoidal time embedding on the EUP, sin and cos fused into one (16, N) sin
    # pass via cos(x) = sin(x + pi/2); one MXU dot consumes both halves.
    row = jax.lax.broadcasted_iota(jnp.int32, (TIME_EMB, 1), 0)
    freq = jnp.where(row < HALF, row, row - HALF).astype(f32)
    phase = jnp.where(row < HALF, 0.0, jnp.pi / 2.0).astype(f32)
    inv_freq = jnp.exp(freq * _NEG2LOG1E4)                 # 1 / 10000^(2i/d)
    sc = jnp.sin(inv_freq * ts + phase)                    # (TIME_EMB, N): [sin; cos]
    h = h + jnp.dot(w[:, 0:TIME_EMB], sc, preferred_element_type=f32)

    # One MXU dot over ALL static lane-dense channels: dow, tod, feature embedding,
    # spatial adjacency, plus the diffusion-step embedding (one-hot batch rows) and
    # bias b1 (ones row) — replaces 4 tiny dots + the (b,k) select loops.
    h = h + jnp.dot(w[:, COL_STATIC:COL_STATIC + FS], feat_ref[...],
                    preferred_element_type=f32)

    h = jnp.maximum(h, 0.0)
    # final projection as an MXU dot instead of a cross-sublane reduce
    pred = jnp.dot(w2_row, h, preferred_element_type=f32) + b2_ref[0]   # (1, N)

    # ---- fused masked-MSE loss pieces (reference: target_mask = actual - missing) ----
    tmask = am - mm
    r = (eps - pred) * tmask
    out_ref[0, 0] = jnp.sum(r * r)
    out_ref[0, 1] = jnp.sum(tmask)


# ------------------------------------- wrapper -------------------------------------
@jax.jit
def cdsti_loss(params, batch, key):
    """CDSTI_base.forward (loss path).  Wrapper glue is only RNG draws, tiny embedding
    gathers and slab packing (all fused under this jit); the numerics run in one
    Pallas kernel."""
    f32 = jnp.float32

    kt, kn = jax.random.split(key)
    t = jax.random.randint(kt, (B,), 0, NUM_STEPS)
    noise = jax.random.normal(kn, (B, K, L), f32)
    cur_alpha = params["alpha_hat"][t]                        # (B,)
    sqrt_a = jnp.sqrt(cur_alpha)
    sqrt_1ma = jnp.sqrt(1.0 - cur_alpha)

    def lane(x):                                              # (B,K,L) -> (1, N)
        return x.reshape(1, N).astype(f32)

    # ---- packed per-point slab (8, N): one DMA instead of 7 ----
    ts_full = jnp.broadcast_to(batch["timestamps"][:, None, :], (B, K, L))
    sqa_full = jnp.broadcast_to(sqrt_a[:, None, None], (B, K, L))
    sqb_full = jnp.broadcast_to(sqrt_1ma[:, None, None], (B, K, L))
    w2_row = jnp.concatenate(
        [params["w2"].reshape(1, HIDDEN), jnp.zeros((1, N - HIDDEN), f32)], axis=1)
    rows = jnp.concatenate(
        [lane(batch["actual_data"]), lane(batch["missing_mask"]),
         lane(batch["actual_mask"]), lane(noise), lane(ts_full),
         lane(sqa_full), lane(sqb_full), w2_row], axis=0)      # (8, N)

    # ---- packed static lane-dense channel slab (FS, N): one DMA ----
    dow_idx = jnp.broadcast_to(batch["dow"][:, None, :], (B, K, L)).reshape(N)
    tod_idx = jnp.broadcast_to(batch["tod"][:, None, :], (B, K, L)).reshape(N)
    dow_feat = params["dow_emb"][dow_idx].T                    # (DOW_E, N)
    tod_feat = params["tod_emb"][tod_idx].T                    # (TOD_E, N)
    emb_lane = jnp.broadcast_to(
        params["embed"].T[:, None, :, None], (FEAT_E, B, K, L)).reshape(FEAT_E, N)
    spa_lane = jnp.broadcast_to(
        jnp.transpose(batch["spa_mat"], (1, 0, 2))[:, :, :, None],
        (K, B, K, L)).reshape(K, N)                            # channel c at (b,k,l) = spa[b,c,k]
    onehot_b = jnp.broadcast_to(
        jnp.eye(B, dtype=f32)[:, :, None, None], (B, B, K, L)).reshape(B, N)
    feat = jnp.concatenate(
        [dow_feat, tod_feat, emb_lane, spa_lane, onehot_b,
         jnp.ones((1, N), f32), jnp.zeros((FS - FS_USED, N), f32)], axis=0)   # (FS, N)

    # ---- packed weight slab (HIDDEN, 128): one DMA ----
    temb_t = params["step_emb"][t].T                           # (HIDDEN, B)
    wpack = jnp.concatenate(
        [params["w_sin"], params["w_cos"],                     # cols  0:16  (sincos dot)
         params["w_dow"], params["w_tod"],                     # cols 16:24
         params["w_feat"], params["w_spa"],                    # cols 24:36
         temb_t, params["b1"],                                 # cols 36:39
         jnp.zeros((HIDDEN, FS - FS_USED), f32),               # cols 39:48  (static pad)
         params["w_in"], params["w_mask"],                     # cols 48:51
         jnp.zeros((HIDDEN, WCOLS - (TIME_EMB + FS + 3)), f32)], axis=1)      # -> (H, 128)

    out = pl.pallas_call(
        _fused_loss_kernel,
        out_shape=jax.ShapeDtypeStruct((1, 2), jnp.float32),
        in_specs=[_smem(), _vmem(), _vmem(), _vmem()],
        out_specs=_smem(),
        cost_estimate=pl.CostEstimate(flops=500_000, transcendentals=2_200,
                                      bytes_accessed=42_000),
    )(params["b2"], rows, feat, wpack)

    ssq, cnt = out[0, 0], out[0, 1]
    return ssq / jnp.where(cnt > 0, cnt, 1.0)


# ----------------------------------- parameters -----------------------------------
def init_params(key, spatial_dim, config):
    m, d = config["model"], config["diffusion"]
    c_pred = 2 + (m["featureemb"] + 1) + (m["timeemb"] + m["dowemb"] + m["todemb"]) + spatial_dim
    scale = 1.0 / np.sqrt(c_pred)
    ks = jax.random.split(key, 13)
    if d["schedule"] == "quad":
        beta = np.linspace(d["beta_start"] ** 0.5, d["beta_end"] ** 0.5, d["num_steps"]) ** 2
    else:
        beta = np.linspace(d["beta_start"], d["beta_end"], d["num_steps"])
    alpha_hat = np.cumprod(1.0 - beta).astype(np.float32)
    H = HIDDEN
    return {
        # embedding tables (nn.Embedding equivalents)
        "embed": 0.1 * jax.random.normal(ks[0], (spatial_dim, m["featureemb"]), jnp.float32),
        "dow_emb": 0.1 * jax.random.normal(ks[1], (7, m["dowemb"]), jnp.float32),
        "tod_emb": 0.1 * jax.random.normal(ks[2], (m["toddim"], m["todemb"]), jnp.float32),
        # stand-in predictor weights, stored channel-group-split and (H, c)-transposed;
        # they are packed into a single (H, 128) slab inside the jitted wrapper.
        "w_in": scale * jax.random.normal(ks[3], (H, 2), jnp.float32),
        "w_mask": scale * jax.random.normal(ks[4], (H, 1), jnp.float32),
        "w_feat": scale * jax.random.normal(ks[5], (H, m["featureemb"]), jnp.float32),
        "w_sin": scale * jax.random.normal(ks[6], (H, m["timeemb"] // 2), jnp.float32),
        "w_cos": scale * jax.random.normal(ks[7], (H, m["timeemb"] // 2), jnp.float32),
        "w_dow": scale * jax.random.normal(ks[8], (H, m["dowemb"]), jnp.float32),
        "w_tod": scale * jax.random.normal(ks[9], (H, m["todemb"]), jnp.float32),
        "w_spa": scale * jax.random.normal(ks[10], (H, spatial_dim), jnp.float32),
        "b1": jnp.zeros((H, 1), jnp.float32),
        "step_emb": 0.1 * jax.random.normal(ks[11], (d["num_steps"], H), jnp.float32),
        "w2": (1.0 / np.sqrt(H)) * jax.random.normal(ks[12], (H, 1), jnp.float32),
        "b2": jnp.zeros((1,), jnp.float32),
        "alpha_hat": jnp.asarray(alpha_hat),
    }


# --------------------------------------- main ---------------------------------------
if __name__ == "__main__":
    key = jax.random.PRNGKey(0)
    k_param, k_data, k_spa, k_fwd = jax.random.split(key, 4)

    params = init_params(k_param, K, CONFIG)

    actual_data = jax.random.normal(k_data, (B, K, L), jnp.float32)
    actual_mask = jnp.ones((B, K, L), jnp.float32)
    timestamps = jnp.broadcast_to(jnp.arange(L, dtype=jnp.float32)[None], (B, L))
    dow = jnp.broadcast_to((jnp.arange(L) % 7).astype(jnp.int32)[None], (B, L))
    tod = jnp.broadcast_to((jnp.arange(L) % CONFIG["model"]["toddim"]).astype(jnp.int32)[None], (B, L))
    spa_mat = jax.random.uniform(k_spa, (B, K, K), jnp.float32)

    # sm_mask_generator (deterministic glue; original uses unseeded np.random for
    # diversity).  missing_mask is nested inside actual_mask, so target_mask >= 0.
    rng = np.random.default_rng(0)
    n_sel = int(round(K * CONFIG["model"]["missing_rate"]))
    selected = rng.choice(np.arange(K), n_sel, replace=False)
    mm = np.ones((B, K, L), np.float32)
    mm[:, selected, :] = 0.0
    missing_mask = jnp.asarray(mm) * actual_mask

    batch = {
        "actual_data": actual_data,
        "actual_mask": actual_mask,
        "missing_mask": missing_mask,
        "timestamps": timestamps,
        "dow": dow,
        "tod": tod,
        "spa_mat": spa_mat,
    }

    loss = cdsti_loss(params, batch, k_fwd)
    loss = jax.block_until_ready(loss)
    assert jnp.isfinite(loss), "loss is not finite"
    print("KERNEL_OK")
</pallas_src>

<mosaic_0001>
module attributes {stable_mosaic.version = 11 : i64} {
  func.func @_fused_loss_kernel(%arg0: memref<1xf32, #tpu.memory_space<smem>>, %arg1: memref<8x128xf32, #tpu.memory_space<vmem>>, %arg2: memref<32x128xf32, #tpu.memory_space<vmem>>, %arg3: memref<32x128xf32, #tpu.memory_space<vmem>>, %arg4: memref<1x2xf32, #tpu.memory_space<smem>>) attributes {dimension_semantics = [], scalar_prefetch = 0 : i64, scratch_operands = 0 : i64, tpu.core_type = #tpu.core_type<tc>} {
    %c0 = arith.constant 0 : index
    %c0_0 = arith.constant 0 : index
    %0 = vector.load %arg1[%c0, %c0_0] : memref<8x128xf32, #tpu.memory_space<vmem>>, vector<1x128xf32>
    %c1 = arith.constant 1 : index
    %c0_1 = arith.constant 0 : index
    %1 = vector.load %arg1[%c1, %c0_1] : memref<8x128xf32, #tpu.memory_space<vmem>>, vector<1x128xf32>
    %c2 = arith.constant 2 : index
    %c0_2 = arith.constant 0 : index
    %2 = vector.load %arg1[%c2, %c0_2] : memref<8x128xf32, #tpu.memory_space<vmem>>, vector<1x128xf32>
    %c3 = arith.constant 3 : index
    %c0_3 = arith.constant 0 : index
    %3 = vector.load %arg1[%c3, %c0_3] : memref<8x128xf32, #tpu.memory_space<vmem>>, vector<1x128xf32>
    %c4 = arith.constant 4 : index
    %c0_4 = arith.constant 0 : index
    %4 = vector.load %arg1[%c4, %c0_4] : memref<8x128xf32, #tpu.memory_space<vmem>>, vector<1x128xf32>
    %c5 = arith.constant 5 : index
    %c0_5 = arith.constant 0 : index
    %5 = vector.load %arg1[%c5, %c0_5] : memref<8x128xf32, #tpu.memory_space<vmem>>, vector<1x128xf32>
    %c6 = arith.constant 6 : index
    %c0_6 = arith.constant 0 : index
    %6 = vector.load %arg1[%c6, %c0_6] : memref<8x128xf32, #tpu.memory_space<vmem>>, vector<1x128xf32>
    %c7 = arith.constant 7 : index
    %c0_7 = arith.constant 0 : index
    %7 = vector.load %arg1[%c7, %c0_7] : memref<8x128xf32, #tpu.memory_space<vmem>>, vector<1x32xf32>
    %8 = arith.mulf %5, %0 : vector<1x128xf32>
    %9 = arith.mulf %6, %3 : vector<1x128xf32>
    %10 = arith.addf %8, %9 : vector<1x128xf32>
    %11 = arith.mulf %1, %0 : vector<1x128xf32>
    %cst = arith.constant 1.000000e+00 : f32
    %12 = vector.broadcast %cst : f32 to vector<1x128xf32>
    %13 = arith.subf %12, %1 : vector<1x128xf32>
    %14 = arith.mulf %13, %10 : vector<1x128xf32>
    %c0_8 = arith.constant 0 : index
    %c0_9 = arith.constant 0 : index
    %15 = vector.load %arg3[%c0_8, %c0_9] : memref<32x128xf32, #tpu.memory_space<vmem>>, vector<32x128xf32>
    %16 = vector.extract_strided_slice %15 {offsets = [0, 48], sizes = [32, 1], strides = [1, 1]} : vector<32x128xf32> to vector<32x1xf32>
    %17 = vector.broadcast %16 : vector<32x1xf32> to vector<32x128xf32>
    %18 = vector.broadcast %11 : vector<1x128xf32> to vector<32x128xf32>
    %19 = arith.mulf %17, %18 : vector<32x128xf32>
    %20 = vector.extract_strided_slice %15 {offsets = [0, 49], sizes = [32, 1], strides = [1, 1]} : vector<32x128xf32> to vector<32x1xf32>
    %21 = vector.broadcast %20 : vector<32x1xf32> to vector<32x128xf32>
    %22 = vector.broadcast %14 : vector<1x128xf32> to vector<32x128xf32>
    %23 = arith.mulf %21, %22 : vector<32x128xf32>
    %24 = arith.addf %19, %23 : vector<32x128xf32>
    %25 = vector.extract_strided_slice %15 {offsets = [0, 50], sizes = [32, 1], strides = [1, 1]} : vector<32x128xf32> to vector<32x1xf32>
    %26 = vector.broadcast %25 : vector<32x1xf32> to vector<32x128xf32>
    %27 = vector.broadcast %1 : vector<1x128xf32> to vector<32x128xf32>
    %28 = arith.mulf %26, %27 : vector<32x128xf32>
    %29 = arith.addf %24, %28 : vector<32x128xf32>
    %30 = tpu.iota {dimensions = array<i32: 0>} : vector<16x1xi32>
    %c8_i32 = arith.constant 8 : i32
    %31 = vector.broadcast %c8_i32 : i32 to vector<16x1xi32>
    %32 = arith.cmpi slt, %30, %31 : vector<16x1xi32>
    %c8_i32_10 = arith.constant 8 : i32
    %33 = vector.broadcast %c8_i32_10 : i32 to vector<16x1xi32>
    %34 = arith.subi %30, %33 : vector<16x1xi32>
    %35 = arith.select %32, %30, %34 : vector<16x1xi1>, vector<16x1xi32>
    %36 = arith.sitofp %35 : vector<16x1xi32> to vector<16x1xf32>
    %c8_i32_11 = arith.constant 8 : i32
    %37 = vector.broadcast %c8_i32_11 : i32 to vector<16x1xi32>
    %38 = arith.cmpi slt, %30, %37 : vector<16x1xi32>
    %cst_12 = arith.constant 0.000000e+00 : f32
    %cst_13 = arith.constant 1.57079637 : f32
    %39 = vector.broadcast %cst_12 : f32 to vector<16x1xf32>
    %40 = vector.broadcast %cst_13 : f32 to vector<16x1xf32>
    %41 = arith.select %38, %39, %40 : vector<16x1xi1>, vector<16x1xf32>
    %cst_14 = arith.constant -1.15129256 : f32
    %42 = vector.broadcast %cst_14 : f32 to vector<16x1xf32>
    %43 = arith.mulf %36, %42 : vector<16x1xf32>
    %44 = math.exp %43 : vector<16x1xf32>
    %45 = vector.broadcast %44 : vector<16x1xf32> to vector<16x128xf32>
    %46 = vector.broadcast %4 : vector<1x128xf32> to vector<16x128xf32>
    %47 = arith.mulf %45, %46 : vector<16x128xf32>
    %48 = vector.broadcast %41 : vector<16x1xf32> to vector<16x128xf32>
    %49 = arith.addf %47, %48 : vector<16x128xf32>
    %50 = math.sin %49 : vector<16x128xf32>
    %51 = vector.extract_strided_slice %15 {offsets = [0, 0], sizes = [32, 16], strides = [1, 1]} : vector<32x128xf32> to vector<32x16xf32>
    %cst_15 = arith.constant dense<0.000000e+00> : vector<32x128xf32>
    %52 = tpu.matmul %51, %50, %cst_15 {dimension_numbers = #tpu.dot_dimension_numbers<[1], [0], [0], [1], [0, 0, 1, 1], [], []>} : vector<32x16xf32>, vector<16x128xf32>, vector<32x128xf32> -> vector<32x128xf32>
    %53 = arith.addf %29, %52 : vector<32x128xf32>
    %54 = vector.extract_strided_slice %15 {offsets = [0, 16], sizes = [32, 32], strides = [1, 1]} : vector<32x128xf32> to vector<32x32xf32>
    %c0_16 = arith.constant 0 : index
    %c0_17 = arith.constant 0 : index
    %55 = vector.load %arg2[%c0_16, %c0_17] : memref<32x128xf32, #tpu.memory_space<vmem>>, vector<32x128xf32>
    %cst_18 = arith.constant dense<0.000000e+00> : vector<32x128xf32>
    %56 = tpu.matmul %54, %55, %cst_18 {dimension_numbers = #tpu.dot_dimension_numbers<[1], [0], [0], [1], [0, 0, 1, 1], [], []>} : vector<32x32xf32>, vector<32x128xf32>, vector<32x128xf32> -> vector<32x128xf32>
    %57 = arith.addf %53, %56 : vector<32x128xf32>
    %cst_19 = arith.constant 0.000000e+00 : f32
    %58 = vector.broadcast %cst_19 : f32 to vector<32x128xf32>
    %59 = arith.maximumf %57, %58 : vector<32x128xf32>
    %cst_20 = arith.constant dense<0.000000e+00> : vector<1x128xf32>
    %60 = tpu.matmul %7, %59, %cst_20 {dimension_numbers = #tpu.dot_dimension_numbers<[1], [0], [0], [1], [0, 0, 1, 1], [], []>} : vector<1x32xf32>, vector<32x128xf32>, vector<1x128xf32> -> vector<1x128xf32>
    %c0_21 = arith.constant 0 : index
    %61 = memref.load %arg0[%c0_21] : memref<1xf32, #tpu.memory_space<smem>>
    %62 = vector.broadcast %61 : f32 to vector<1x128xf32>
    %63 = arith.addf %60, %62 : vector<1x128xf32>
    %64 = arith.subf %2, %1 : vector<1x128xf32>
    %65 = arith.subf %3, %63 : vector<1x128xf32>
    %66 = arith.mulf %65, %64 : vector<1x128xf32>
    %67 = arith.mulf %66, %66 : vector<1x128xf32>
    %68 = vector.shape_cast %67 : vector<1x128xf32> to vector<1x1x128xf32>
    %cst_22 = arith.constant dense<0.000000e+00> : vector<1xf32>
    %69 = vector.multi_reduction <add>, %68, %cst_22 [1, 2] : vector<1x1x128xf32> to vector<1xf32>
    %70 = vector.shape_cast %69 : vector<1xf32> to vector<1x1x1xf32>
    %71 = vector.extract %70[0, 0, 0] : f32 from vector<1x1x1xf32>
    %c0_23 = arith.constant 0 : index
    %c0_24 = arith.constant 0 : index
    %72 = memref.load %arg4[%c0_23, %c0_24] : memref<1x2xf32, #tpu.memory_space<smem>>
    memref.store %71, %arg4[%c0_23, %c0_24] : memref<1x2xf32, #tpu.memory_space<smem>>
    %73 = vector.shape_cast %64 : vector<1x128xf32> to vector<1x1x128xf32>
    %cst_25 = arith.constant dense<0.000000e+00> : vector<1xf32>
    %74 = vector.multi_reduction <add>, %73, %cst_25 [1, 2] : vector<1x1x128xf32> to vector<1xf32>
    %75 = vector.shape_cast %74 : vector<1xf32> to vector<1x1x1xf32>
    %76 = vector.extract %75[0, 0, 0] : f32 from vector<1x1x1xf32>
    %c0_26 = arith.constant 0 : index
    %c1_27 = arith.constant 1 : index
    %77 = memref.load %arg4[%c0_26, %c1_27] : memref<1x2xf32, #tpu.memory_space<smem>>
    memref.store %76, %arg4[%c0_26, %c1_27] : memref<1x2xf32, #tpu.memory_space<smem>>
    return
  }
}

</mosaic_0001>

<bundles_post_ra>
// kernel: cdsti_loss.17
= control target key start
LH: loop header
LB: loop body
LE: loop exit
PB: predicated region body
PF: predicated region fallthrough
CT: control target
= control target key end

     0   :  { %v57_v2 = vlaneseq  ;;  %s818_s19 = smov 112   ;;  %vm355_vm0 = vcmask 130048   ;;  %v819_v11 = vmov 49   ;;  %s1054_s0 = inlined_call_operand.<no memory space> [shape: f32[1], index: 0, kind: input, shape index: {}]   ;;  %s1055_s1 = inlined_call_operand.vmem [shape: f32[8,128], index: 1, kind: input, shape index: {}]   ;;  %s1056_s2 = inlined_call_operand.vmem [shape: f32[32,128], index: 2, kind: input, shape index: {}]   ;;  %s1057_s3 = inlined_call_operand.vmem [shape: f32[32,128], index: 3, kind: input, shape index: {}]   ;;  %s1058_s4 = inlined_call_operand.vmem [shape: f32[1,2], index: 4, kind: output, shape index: {}]  }
   0x1   :  { %v859_v0 = vld [vmem:[%s1057_s3] sm:$0xff]  ;;  %v864_v1 = vld [vmem:[%s1057_s3 + $0x10] sm:$0xff]  ;;  %v871_v3 = vld [vmem:[%s1057_s3 + $0x8] sm:$0xff]  ;;  %784 = vset.pattern.permute.xlu1 %v819_v11  ;;  %786 = vset.pattern.permute.xlu0 %v819_v11 }
   0x2   :  { %457 = vrot.lane.b32.xlu0 %v859_v0, %s818_s19  ;;  %461 = vrot.lane.b32.xlu1 %v864_v1, %s818_s19  ;;  %v876_v4 = vld [vmem:[%s1057_s3 + $0x18] sm:$0xff]  ;;  %v878_v5 = vshrl.u32 %v57_v2, 7  ;;  %v455_v7 = vld [vmem:[%s1056_s2 + $0x10] sm:$0xff] }
   0x3   :  { %v456_v6 = vld [vmem:[%s1056_s2 + $0x18] sm:$0xff]  ;;  %728 = vmatprep.mubr.msk.f32.mxu0 %vm355_vm0, %v859_v0  ;;  %v454_v9 = vld [vmem:[%s1056_s2 + $0x8] sm:$0xff]  ;;  %v453_v12 = vld [vmem:[%s1056_s2] sm:$0xff] }
   0x4   :  { %734 = vmatprep.subr.mxu1 %v456_v6  ;;  %v129_v8 = vcvt.s32.f32 %v878_v5 }
   0x5   :  { %735 = vmatpush3.msra.mxu1 %v456_v6 }
   0x6   :  { %459 = vrot.lane.b32.xlu0 %v871_v3, %s818_s19  ;;  %463 = vrot.lane.b32.xlu1 %v876_v4, %s818_s19  ;;  %v133_v10 = vmul.f32 -1.1512926, %v129_v8 }
   0x7   :  { %736 = vmatprep.subr.mxu1 %v455_v7 }
   0x8   :  { %737 = vmatpush3.msra.mxu1 %v455_v7 }
   0x9   :  { %10 = vsyncpa [#allocation4], 0  ;;  %v135_v13 = vmul.f32 1.442695, %v133_v10  ;;  %738 = vmatprep.subr.mxu1 %v454_v9  ;;  %v820_v14 = vmov 48   ;;  %v821_v15 = vmov 50  }
   0xa   :  { %739 = vmatpush3.msra.mxu1 %v454_v9  ;;  %78 = vperm.xlu1 %784, %v876_v4   ;;  %v687_v16 = vld [vmem:[%s1055_s1 + $0x4] ss:$0 sm:$0xff]  ;;  %v822_v42 = vmov 683565275   ;;  %v823_v44 = vmov 2475754826  }
   0xb   :  { %794 = vpow2.f32 %v135_v13  ;;  %740 = vmatprep.subr.mxu1 %v453_v12  ;;  %74 = vperm.xlu0 %786, %v864_v1   ;;  %v824_v49 = vmov 2131351028   ;;  %v825_v51 = vmov 2102212464   ;;  %v826_v53 = vmov 920167782  }
   0xc   :  { %741 = vmatpush3.msra.mxu1 %v453_v12  ;;  %v827_v61 = vmov 1326507024   ;;  %s677_s22 = sshll.u32 %s1058_s4, 4  ;;  %s678_s22 = int_to_ptr.vmem [resolvable:$true] %s677_s22 }
   0xd   :  { %s804_s25 = scalar_lea.vmem %s678_s22, 16  ;;  %p809_p1 = scmp.lt.s32.totalorder %s678_s22, %s678_s22 }
   0xe   :  { %785 = vset.pattern.permute.xlu1 %v820_v14  ;;  %p805_p0 = scmp.ne.s32.totalorder %s678_s22, %s804_s25  ;;  %p810_p2 = scmp.lt.s32.totalorder %s804_s25, %s804_s25 }
   0xf   :  { %49 = vperm.xlu1 %785, %v864_v1   ;;  %70 = vperm.xlu0 %786, %v871_v3  }
  0x10   :  { %p811_p3 = por %p810_p2, %p809_p1 }
  0x12   :  { %p812_p4 = pnand %p811_p3, %p805_p0 }
  0x13   :  { %787 = vset.pattern.permute.xlu1 %v821_v15  ;;  %789 = vset.pattern.permute.xlu0 %v820_v14 }
  0x14   :  { %106 = vperm.xlu1 %787, %v876_v4   ;;  %54 = vperm.xlu0 %789, %v876_v4  }
  0x18   :  { %v795_v17 = vpop.eup %794  ;;  %788 = vset.pattern.permute.xlu1 %v820_v14  ;;  %39 = vperm.xlu0 %789, %v859_v0  }
  0x19   :  { %v907_v18 = vmul.f32 %v795_v17, %v687_v16  ;;  %44 = vperm.xlu1 %788, %v871_v3  }
  0x1b   :  { %v911_v19 = vadd.f32 1.5707964, %v907_v18  ;;  %v150_v20 = vand.u32 2139095040, %v907_v18  ;;  %v147_v26 = vand.u32 2147483647, %v907_v18 }
  0x1c   :  { %793 = vset.pattern.permute.xlu0 %v821_v15 }
  0x1d   :  { %v251_v21 = vand.u32 2147483647, %v911_v19  ;;  %v254_v22 = vand.u32 2139095040, %v911_v19  ;;  %790 = vset.pattern.permute.xlu1 %v821_v15  ;;  %94 = vperm.xlu0 %793, %v859_v0   ;;  %v151_v23 = vshrl.u32 %v150_v20, 23  ;;  %v923_v32 = vand.u32 8388607, %v147_v26 }
  0x1e   :  { %102 = vperm.xlu1 %790, %v864_v1   ;;  %vm253_vm15 = vcmp.lt.s32.totalorder %v911_v19, 0 }
  0x1f   :  { %v255_v24 = vshrl.u32 %v254_v22, 23  ;;  %v258_v25 = vand.u32 8388607, %v251_v21  ;;  %v688_v27 = vadd.s32 4294967169, %v151_v23  ;;  %v155_v39 = vor.u32 8388608, %v923_v32 }
  0x21   :  { %v692_v28 = vadd.s32 4294967169, %v255_v24  ;;  %v157_v29 = vadd.s32 1, %v688_v27  ;;  %v259_v30 = vor.u32 8388608, %v258_v25 }
  0x22   :  { %791 = vset.pattern.permute.xlu1 %v819_v11 }
  0x23   :  { %v261_v31 = vadd.s32 1, %v692_v28  ;;  %66 = vperm.xlu1 %791, %v859_v0   ;;  %vm158_vm1 = vcmp.gt.s32.totalorder %v157_v29, 0  ;;  %v926_v38 = vshll.u32 %v259_v30, 8 }
  0x24   :  { %v159_v33 = vsel %vm158_vm1, %v157_v29, 0  ;;  %vm985_vm1 = vcmp.le.f32.partialorder %v251_v21, 0.7853982 }
  0x25   :  { %vm262_vm2 = vcmp.gt.s32.totalorder %v261_v31, 0  ;;  %v161_v35 = vand.u32 31, %v159_v33  ;;  %v929_v40 = vshrl.u32 %v159_v33, 5 }
  0x26   :  { %v263_v34 = vsel %vm262_vm2, %v261_v31, 0  ;;  %vm149_vm2 = vcmp.lt.s32.totalorder %v907_v18, 0 }
  0x27   :  { %v264_v36 = vshrl.u32 %v263_v34, 5  ;;  %v265_v37 = vand.u32 31, %v263_v34  ;;  %792 = vset.pattern.permute.xlu1 %v821_v15  ;;  %v162_v41 = vsub.s32 32, %v161_v35  ;;  %v164_v43 = vshll.u32 %v822_v42, %v161_v35 }
  0x28   :  { %v167_v45 = vshll.u32 %v823_v44, %v161_v35  ;;  %98 = vperm.xlu1 %792, %v871_v3   ;;  %v170_v55 = vshll.u32 %v824_v49, %v161_v35  ;;  %vm179_vm7 = vcmp.lt.s32.totalorder %v929_v40, 1  ;;  %vm180_vm8 = vcmp.lt.s32.totalorder %v929_v40, 2 }
  0x29   :  { %v266_v46 = vsub.s32 32, %v265_v37  ;;  %v268_v47 = vshll.u32 %v822_v42, %v265_v37  ;;  %v271_v48 = vshll.u32 %v823_v44, %v265_v37  ;;  %v274_v50 = vshll.u32 %v824_v49, %v265_v37 }
  0x2a   :  { %v277_v52 = vshll.u32 %v825_v51, %v265_v37  ;;  %v280_v54 = vshll.u32 %v826_v53, %v265_v37  ;;  %vm283_vm3 = vcmp.lt.s32.totalorder %v264_v36, 1  ;;  %vm284_vm4 = vcmp.lt.s32.totalorder %v264_v36, 2 }
  0x2b   :  { %v267_v56 = vshrl.u32 %v822_v42, %v266_v46  ;;  %v269_v57 = vshrl.u32 %v823_v44, %v266_v46  ;;  %v272_v58 = vshrl.u32 %v824_v49, %v266_v46  ;;  %v275_v59 = vshrl.u32 %v825_v51, %v266_v46 }
  0x2c   :  { %v278_v60 = vshrl.u32 %v826_v53, %v266_v46  ;;  %v281_v62 = vshrl.u32 %v827_v61, %v266_v46  ;;  %vm285_vm5 = vcmp.lt.s32.totalorder %v264_v36, 3  ;;  %vm286_vm6 = vcmp.lt.s32.totalorder %v264_v36, 4 }
  0x2d   :  { %v270_v63 = vor.u32 %v269_v57, %v268_v47  ;;  %v273_v0 = vor.u32 %v272_v58, %v271_v48  ;;  %v276_v2 = vor.u32 %v275_v59, %v274_v50  ;;  %v165_v8 = vshrl.u32 %v823_v44, %v162_v41 }
  0x2e   :  { %v279_v6 = vor.u32 %v278_v60, %v277_v52  ;;  %v282_v7 = vor.u32 %v281_v62, %v280_v54  ;;  %v168_v9 = vshrl.u32 %v824_v49, %v162_v41  ;;  %v163_v17 = vshrl.u32 %v822_v42, %v162_v41 }
  0x2f   :  { %v287_v10 = vsel %vm283_vm3, %v267_v56, %v270_v63  ;;  %v288_v11 = vsel %vm286_vm6, %v276_v2, 2102212464  ;;  %v291_v12 = vsel %vm283_vm3, %v270_v63, %v273_v0  ;;  %v295_v13 = vsel %vm283_vm3, %v273_v0, %v276_v2 }
  0x30   :  { %v289_v14 = vsel %vm285_vm5, %v273_v0, %v288_v11  ;;  %v292_v15 = vsel %vm286_vm6, %v279_v6, 920167782  ;;  %v296_v16 = vsel %vm286_vm6, %v282_v7, 1326507024  ;;  %v166_v24 = vor.u32 %v165_v8, %v164_v43 }
  0x31   :  { %v290_v20 = vsel %vm284_vm4, %v287_v10, %v289_v14  ;;  %v293_v22 = vsel %vm285_vm5, %v276_v2, %v292_v15  ;;  %v297_v23 = vsel %vm285_vm5, %v279_v6, %v296_v16  ;;  %v169_v28 = vor.u32 %v168_v9, %v167_v45 }
  0x32   :  { %v294_v25 = vsel %vm284_vm4, %v291_v12, %v293_v22  ;;  %v298_v27 = vsel %vm284_vm4, %v295_v13, %v297_v23  ;;  %v171_v29 = vshrl.u32 %v825_v51, %v162_v41  ;;  %v173_v42 = vshll.u32 %v825_v51, %v161_v35 }
  0x33   :  { %v942_v30 = vmul.u32.u64.low %v926_v38, %v298_v27  ;;  %v943_v31 = vmul.u32.u64.high %v926_v38, %v298_v27, %v942_v30  ;;  %v946_v33 = vmul.u32.u64.low %v926_v38, %v294_v25  ;;  %v947_v34 = vmul.u32.u64.high %v926_v38, %v294_v25, %v946_v33 }
  0x34   :  { %v172_v37 = vor.u32 %v171_v29, %v170_v55  ;;  %v174_v44 = vshrl.u32 %v826_v53, %v162_v41  ;;  %v176_v46 = vshll.u32 %v826_v53, %v161_v35  ;;  %v306_v43 = vmul.u32 %v926_v38, %v290_v20 }
  0x35   :  { %v177_v47 = vshrl.u32 %v827_v61, %v162_v41  ;;  %v195_v36 = vshll.u32 %v155_v39, 8  ;;  %vm181_vm9 = vcmp.lt.s32.totalorder %v929_v40, 3  ;;  %vm182_vm10 = vcmp.lt.s32.totalorder %v929_v40, 4 }
  0x36   :  { %v175_v45 = vor.u32 %v174_v44, %v173_v42  ;;  %vm308_vm11 = vc.u32 %v943_v31, %v946_v33  ;;  %v309_v48 = vadd.s32 1, %v947_v34  ;;  %v187_v49 = vsel %vm179_vm7, %v166_v24, %v169_v28 }
  0x37   :  { %v178_v35 = vor.u32 %v177_v47, %v176_v46  ;;  %v183_v38 = vsel %vm179_vm7, %v163_v17, %v166_v24  ;;  %v184_v41 = vsel %vm182_vm10, %v172_v37, 2102212464  ;;  %v191_v51 = vsel %vm179_vm7, %v169_v28, %v172_v37 }
  0x38   :  { %v188_v50 = vsel %vm182_vm10, %v175_v45, 920167782  ;;  %v310_v32 = vsel %vm308_vm11, %v309_v48, %v947_v34  ;;  %v185_v39 = vsel %vm181_vm9, %v169_v28, %v184_v41  ;;  %v307_v20 = vadd.s32 %v946_v33, %v943_v31 }
  0x39   :  { %v189_v52 = vsel %vm181_vm9, %v172_v37, %v188_v50  ;;  %v192_v53 = vsel %vm182_vm10, %v178_v35, 1326507024  ;;  %v311_v54 = vadd.s32 %v310_v32, %v306_v43  ;;  %v186_v57 = vsel %vm180_vm8, %v183_v38, %v185_v39 }
  0x3a   :  { %v190_v55 = vsel %vm180_vm8, %v187_v49, %v189_v52  ;;  %v193_v56 = vsel %vm181_vm9, %v175_v45, %v192_v53  ;;  %v202_v2 = vmul.u32 %v195_v36, %v186_v57  ;;  %vm148_vm3 = vcmp.le.f32.partialorder %v147_v26, 0.7853982 }
  0x3b   :  { %v194_v58 = vsel %vm180_vm8, %v191_v51, %v193_v56  ;;  %v971_v59 = vmul.u32.u64.low %v195_v36, %v190_v55  ;;  %v972_v60 = vmul.u32.u64.high %v195_v36, %v190_v55, %v971_v59  ;;  %v312_v61 = vadd.s32 536870912, %v311_v54 }
  0x3c   :  { %v974_v62 = vmul.u32.u64.low %v195_v36, %v194_v58  ;;  %v975_v63 = vmul.u32.u64.high %v195_v36, %v194_v58, %v974_v62  ;;  %vm343_vm7 = vweird.f32 %v911_v19  ;;  %vm465_vm8 = vcmask 261120  }
  0x3d   :  { %v313_v0 = vshrl.u32 %v312_v61, 30  ;;  %v205_v6 = vadd.s32 1, %v972_v60 }
  0x3e   :  { %vm204_vm12 = vc.u32 %v975_v63, %v971_v59  ;;  %v203_v47 = vadd.s32 %v971_v59, %v975_v63 }
  0x3f   :  { %v314_v7 = vshll.u32 %v313_v0, 30  ;;  %v206_v8 = vsel %vm204_vm12, %v205_v6, %v972_v60  ;;  %v337_v49 = vsub.s32 4, %v313_v0  ;;  %vm239_vm12 = vweird.f32 %v907_v18 }
  0x40   :  { %v207_v10 = vadd.s32 %v206_v8, %v202_v2 }
  0x41   :  { %v315_v9 = vsub.s32 %v311_v54, %v314_v7  ;;  %v338_v53 = vsel %vm253_vm15, %v337_v49, %v313_v0 }
  0x42   :  { %v208_v11 = vadd.s32 536870912, %v207_v10  ;;  %v340_v21 = vsel %vm985_vm1, 0, %v338_v53 }
  0x43   :  { %v317_v40 = vsub.s32 0, %v315_v9  ;;  %v344_v60 = vadd.s32 3, %v340_v21 }
  0x44   :  { %v209_v13 = vshrl.u32 %v208_v11, 30 }
  0x45   :  { %v693_v12 = vmin.u32 %v317_v40, %v315_v9  ;;  %v345_v2 = vand.u32 3, %v344_v60 }
  0x46   :  { %v210_v15 = vshll.u32 %v209_v13, 30  ;;  %v233_v59 = vsub.s32 4, %v209_v13 }
  0x47   :  { %v319_v14 = vclz %v693_v12  ;;  %vm350_vm4 = vcmp.eq.s32.totalorder %v345_v2, 2  ;;  %vm347_vm5 = vcmp.eq.s32.totalorder %v345_v2, 0  ;;  %vm346_vm6 = vcmp.lt.s32.totalorder %v345_v2, 2 }
  0x48   :  { %v211_v17 = vsub.s32 %v207_v10, %v210_v15  ;;  %v234_v63 = vsel %vm149_vm2, %v233_v59, %v209_v13 }
  0x49   :  { %v694_v16 = vadd.s32 4294967294, %v319_v14  ;;  %v236_v6 = vsel %vm148_vm3, 0, %v234_v63 }
  0x4a   :  { %v213_v23 = vsub.s32 0, %v211_v17  ;;  %v240_v10 = vadd.s32 3, %v236_v6 }
  0x4b   :  { %vm695_vm13 = vcmp.lt.s32.totalorder %v694_v16, 0 }
  0x4c   :  { %v322_v22 = vsel %vm695_vm13, 0, %v694_v16  ;;  %v689_v28 = vmin.u32 %v213_v23, %v211_v17  ;;  %v241_v13 = vand.u32 3, %v240_v10  ;;  %vm829_vm13 = vmmov 0  }
  0x4d   :  { %v323_v24 = vsub.s32 32, %v322_v22  ;;  %v324_v25 = vshll.u32 %v315_v9, %v322_v22  ;;  %v327_v27 = vsub.s32 4294967266, %v322_v22 }
  0x4e   :  { %v215_v34 = vclz %v689_v28  ;;  %vm246_vm9 = vcmp.eq.s32.totalorder %v241_v13, 2  ;;  %vm243_vm10 = vcmp.eq.s32.totalorder %v241_v13, 0  ;;  %vm242_vm11 = vcmp.lt.s32.totalorder %v241_v13, 2 }
  0x4f   :  { %v325_v29 = vshrl.u32 %v307_v20, %v323_v24  ;;  %v328_v30 = vadd.s32 127, %v327_v27 }
  0x50   :  { %v690_v44 = vadd.s32 4294967294, %v215_v34 }
  0x51   :  { %v326_v37 = vor.u32 %v325_v29, %v324_v25  ;;  %v329_v42 = vshll.u32 %v328_v30, 23 }
  0x52   :  { %vm691_vm14 = vcmp.lt.s32.totalorder %v690_v44, 0 }
  0x53   :  { %v330_v46 = vor.u32 4788187, %v329_v42  ;;  %v333_v43 = vcvt.s32.f32 %v326_v37  ;;  %v218_v31 = vsel %vm691_vm14, 0, %v690_v44  ;;  %v25_v44 = vld [vmem:[%s1055_s1 + $0x6] sm:$0x1] }
  0x54   :  { %v219_v33 = vsub.s32 32, %v218_v31  ;;  %v220_v45 = vshll.u32 %v211_v17, %v218_v31  ;;  %v223_v48 = vsub.s32 4294967266, %v218_v31 }
  0x55   :  { %v331_v36 = vand.u32 2147483647, %v330_v46 }
  0x56   :  { %v221_v38 = vshrl.u32 %v203_v47, %v219_v33  ;;  %v224_v41 = vadd.s32 127, %v223_v48  ;;  %v1030_v47 = vld [vmem:[%s1055_s1 + $0x1] sm:$0x1] }
  0x57   :  { %v334_v35 = vmul.f32 %v333_v43, %v331_v36 }
  0x58   :  { %v222_v32 = vor.u32 %v221_v38, %v220_v45  ;;  %v225_v39 = vshll.u32 %v224_v41, 23  ;;  %v31_v45 = vsub.f32 1.0, %v1030_v47 }
  0x59   :  { %v335_v51 = vxor.u32 2147483648, %v334_v35 }
  0x5a   :  { %v226_v55 = vor.u32 4788187, %v225_v39  ;;  %v229_v56 = vcvt.s32.f32 %v222_v32 }
  0x5b   :  { %v336_v52 = vsel %vm253_vm15, %v335_v51, %v334_v35  ;;  %v59_v35 = vsub.s32 0, %v878_v5 }
  0x5c   :  { %v339_v54 = vsel %vm985_vm1, %v911_v19, %v336_v52  ;;  %v227_v57 = vand.u32 2147483647, %v226_v55 }
  0x5d   :  { %796 = vcosq.f32 %v339_v54  ;;  %v112_v53 = vrot.slane %v1030_v47, %v59_v35 }
  0x5e   :  { %798 = vsinq.f32 %v339_v54  ;;  %v230_v58 = vmul.f32 %v229_v56, %v227_v57 }
  0x60   :  { %v231_v61 = vxor.u32 2147483648, %v230_v58 }
  0x62   :  { %v232_v62 = vsel %vm149_vm2, %v231_v61, %v230_v58 }
  0x63   :  { %v235_v0 = vsel %vm148_vm3, %v907_v18, %v232_v62  ;;  %v828_v18 = vmov 0.0  }
  0x64   :  { %800 = vcosq.f32 %v235_v0 }
  0x65   :  { %802 = vsinq.f32 %v235_v0 }
  0x6a   :  { %v797_v7 = vpop.eup %796 }
  0x6b   :  { %v799_v8 = vpop.eup %798  ;;  %v351_v9 = vxor.u32 2147483648, %v797_v7 }
  0x6c   :  { %v348_v40 = vxor.u32 2147483648, %v799_v8 }
  0x6d   :  { %v352_v26 = vsel %vm350_vm4, %v351_v9, %v799_v8 }
  0x6e   :  { %v349_v11 = vsel %vm347_vm5, %v797_v7, %v348_v40 }
  0x6f   :  { %v353_v12 = vsel %vm346_vm6, %v349_v11, %v352_v26 }
  0x70   :  { %v354_v14 = vsel %vm343_vm7, nan, %v353_v12 }
  0x71   :  { %724 = vmatprep.subr.mxu0 %v354_v14  ;;  %v801_v15 = vpop.eup %800 }
  0x72   :  { %725 = vmatpush3.msra.mxu0 %v354_v14  ;;  %v803_v20 = vpop.eup %802  ;;  %v247_v22 = vxor.u32 2147483648, %v801_v15 }
  0x73   :  { %v244_v23 = vxor.u32 2147483648, %v803_v20 }
  0x74   :  { %v458_v16 = vpop.permute.xlu0 %457  ;;  %v462_v17 = vpop.permute.xlu1 %461  ;;  %v248_v19 = vsel %vm246_vm9, %v247_v22, %v803_v20 }
  0x75   :  { %742 = vmatprep.mubr.msk.f32.mxu1 %vm465_vm8, %v458_v16  ;;  %v245_v24 = vsel %vm243_vm10, %v801_v15, %v244_v23 }
  0x76   :  { %v249_v27 = vsel %vm242_vm11, %v245_v24, %v248_v19 }
  0x77   :  { %v250_v28 = vsel %vm239_vm12, nan, %v249_v27 }
  0x78   :  { %v460_v25 = vpop.permute.xlu0 %459  ;;  %v464_v29 = vpop.permute.xlu1 %463  ;;  %726 = vmatprep.subr.mxu0 %v250_v28 }
  0x79   :  { %743 = vmatmul.mubr.msk.f32.vlgmr.msra.gmra.mxu1 %vm465_vm8, %v460_v25  ;;  %727 = vmatpush3.msra.mxu0 %v250_v28 }
  0x7a   :  { %745 = vmatprep.mubr.msk.f32.mxu1 %vm465_vm8, %v462_v17  ;;  %729 = vmatmul.mubr.msk.f32.vlgmr.msra.gmra.mxu0 %vm355_vm0, %v871_v3  ;;  %v19_v3 = vld [vmem:[%s1055_s1] sm:$0x1] }
  0x7b   :  { %731 = vmatprep.mubr.msk.f32.mxu0 %vm355_vm0, %v864_v1  ;;  %748 = vmatprep.subr.mxu0 %v828_v18  ;;  %v1018_v1 = vld [vmem:[%s1055_s1 + $0x3] sm:$0x1]  ;;  %v30_v38 = vmul.f32 %v1030_v47, %v19_v3 }
  0x7c   :  { %v28_v43 = vmul.f32 %v25_v44, %v1018_v1 }
  0x7d   :  { %746 = vmatmul.mubr.msk.f32.gmra.mxu1 %vm465_vm8, %v464_v29  ;;  %v60_v51 = vrot.slane %v30_v38, %v59_v35 }
  0x7e   :  { %732 = vmatmul.mubr.msk.f32.gmra.mxu0 %vm355_vm0, %v876_v4  ;;  %v24_v4 = vld [vmem:[%s1055_s1 + $0x5] sm:$0x1]  ;;  %vm646_vm0 = vcmask 1040384  }
  0x7f   :  { %756 = vmatprep.mubr.msk.f32.mxu0 %vm829_vm13, %v828_v18  ;;  %v27_v46 = vmul.f32 %v24_v4, %v19_v3  ;;  %v21_v4 = vld [vmem:[%s1055_s1 + $0x2] sm:$0x1] }
  0x80   :  { %v642_v44 = vsub.f32 %v21_v4, %v1030_v47 }
  0x81   :  { %v29_v33 = vadd.f32 %v28_v43, %v27_v46  ;;  %v568_v43 = vstv %s1054_s0 }
  0x82   :  { %v659_v46 = vsel %vm646_vm0, %v642_v44, 0.0 }
  0x83   :  { %v32_v49 = vmul.f32 %v31_v45, %v29_v33  ;;  %660 = vadd.xlane.f32.xlu0 %v659_v46 }
  0x85   :  { %v79_v30 = vpop.permute.xlu1 %78  ;;  %v84_v50 = vrot.slane %v32_v49, %v59_v35 }
  0x86   :  { %v75_v42 = vpop.permute.xlu0 %74 }
  0x87   :  { %v88_v52 = vmul.f32 %v84_v50, %v79_v30  ;;  %v87_v55 = vmul.f32 %v84_v50, %v75_v42  ;;  %v26_v42 = vld [vmem:[%s1055_s1 + $0x7] sm:$0x1] }
  0x8a   :  { %v50_v34 = vpop.permute.xlu1 %49  ;;  %v71_v31 = vpop.permute.xlu0 %70 }
  0x8b   :  { %v63_v56 = vmul.f32 %v60_v51, %v50_v34  ;;  %v86_v57 = vmul.f32 %v84_v50, %v71_v31 }
  0x8d   :  { %v91_v2 = vadd.f32 %v87_v55, %v63_v56 }
  0x8f   :  { %v107_v37 = vpop.permute.xlu1 %106  ;;  %v55_v41 = vpop.permute.xlu0 %54 }
  0x90   :  { %v64_v54 = vmul.f32 %v60_v51, %v55_v41  ;;  %v116_v63 = vmul.f32 %v112_v53, %v107_v37 }
  0x92   :  { %v92_v0 = vadd.f32 %v88_v52, %v64_v54 }
  0x93   :  { %v40_v32 = vpop.permute.xlu0 %39 }
  0x94   :  { %v45_v36 = vpop.permute.xlu1 %44  ;;  %v61_v60 = vmul.f32 %v60_v51, %v40_v32  ;;  %v120_v12 = vadd.f32 %v116_v63, %v92_v0 }
  0x95   :  { %v62_v21 = vmul.f32 %v60_v51, %v45_v36 }
  0x97   :  { %v90_v6 = vadd.f32 %v86_v57, %v62_v21 }
  0x98   :  { %v95_v5 = vpop.permute.xlu0 %94 }
  0x99   :  { %v103_v48 = vpop.permute.xlu1 %102  ;;  %v113_v40 = vmul.f32 %v112_v53, %v95_v5 }
  0x9a   :  { %v115_v8 = vmul.f32 %v112_v53, %v103_v48 }
  0x9c   :  { %v119_v17 = vadd.f32 %v115_v8, %v91_v2 }
  0x9e   :  { %v67_v39 = vpop.permute.xlu1 %66 }
  0x9f   :  { %v85_v59 = vmul.f32 %v84_v50, %v67_v39 }
  0xa1   :  { %v89_v10 = vadd.f32 %v85_v59, %v61_v60 }
  0xa3   :  { %v99_v61 = vpop.permute.xlu1 %98  ;;  %v117_v15 = vadd.f32 %v113_v40, %v89_v10 }
  0xa4   :  { %v114_v9 = vmul.f32 %v112_v53, %v99_v61 }
  0xa6   :  { %v118_v14 = vadd.f32 %v114_v9, %v90_v6 }
 0x10c   :  { %v661_v49 = vpop.xlane.xlu0 %660 }
 0x10d   :  { %v662_v38 = vrot.slane %v661_v49, 4 }
 0x10f   :  { %v663_v41 = vadd.f32 %v662_v38, %v661_v49 }
 0x111   :  { %v664_v50 = vrot.slane %v663_v41, 2 }
 0x113   :  { %v665_v39 = vadd.f32 %v664_v50, %v663_v41 }
 0x115   :  { %v666_v54 = vrot.slane %v665_v39, 1 }
 0x117   :  { %v667_v57 = vadd.f32 %v666_v54, %v665_v39 }
 0x139   :  { %v744_v58 = vpop.f32.mrf.mxu1 }
 0x13a   :  { %v730_v7 = vpop.f32.mrf.mxu0 }
 0x13b   :  { %v540_v62 = vpop.f32.mrf.mxu1  ;;  %v450_v23 = vadd.f32 %v730_v7, %v118_v14 }
 0x13c   :  { %v430_v26 = vpop.f32.mrf.mxu0 }
 0x13d   :  { %v747_v11 = vpop.f32.mrf.mxu1  ;;  %v449_v25 = vadd.f32 %v430_v26, %v117_v15  ;;  %v560_v27 = vadd.f32 %v744_v58, %v450_v23 }
 0x13e   :  { %v733_v13 = vpop.f32.mrf.mxu0 }
 0x13f   :  { %v452_v16 = vadd.f32 %v733_v13, %v120_v12  ;;  %v550_v22 = vpop.f32.mrf.mxu1  ;;  %v559_v30 = vadd.f32 %v540_v62, %v449_v25  ;;  %v564_v37 = vmax.f32 %v560_v27, 0.0 }
 0x140   :  { %v440_v20 = vpop.f32.mrf.mxu0 }
 0x141   :  { %v451_v19 = vadd.f32 %v440_v20, %v119_v17  ;;  %v562_v24 = vadd.f32 %v747_v11, %v452_v16  ;;  %v563_v3 = vmax.f32 %v559_v30, 0.0 }
 0x143   :  { %v566_v28 = vmax.f32 %v562_v24, 0.0  ;;  %v561_v29 = vadd.f32 %v550_v22, %v451_v19 }
 0x145   :  { %v565_v34 = vmax.f32 %v561_v29, 0.0  ;;  %749 = vmatpush3.msra.mxu0 %v566_v28 }
 0x146   :  { %750 = vmatprep.subr.mxu0 %v828_v18 }
 0x147   :  { %751 = vmatpush3.msra.mxu0 %v565_v34 }
 0x148   :  { %752 = vmatprep.subr.mxu0 %v828_v18 }
 0x149   :  { %753 = vmatpush3.msra.mxu0 %v564_v37 }
 0x14a   :  { %754 = vmatprep.subr.mxu0 %v828_v18 }
 0x14b   :  { %755 = vmatpush3.msra.mxu0 %v563_v3 }
 0x14c   :  { %757 = vmatmul.mubr.msk.f32.vlgmr.msra.gmra.mxu0 %vm465_vm8, %v26_v42 }
 0x20c   :  { %v638_v36 = vpop.f32.mrf.mxu0 }
 0x20d   :  { %v639_v31 = vadd.f32 %v638_v36, %v568_v43 }
 0x20e   :  { %v758_v33 = vpop.f32.mrf.mxu0 }
 0x20f   :  { %v643_v18 = vsub.f32 %v1018_v1, %v639_v31 }
 0x211   :  { %v644_v45 = vmul.f32 %v643_v18, %v642_v44 }
 0x213   :  { %v645_v48 = vmul.f32 %v644_v45, %v644_v45 }
 0x215   :  { %v647_v35 = vsel %vm646_vm0, %v645_v48, 0.0 }
 0x216   :  { %648 = vadd.xlane.f32.xlu1 %v647_v35 }
 0x29f   :  { %v649_v47 = vpop.xlane.xlu1 %648 }
 0x2a0   :  { %v650_v51 = vrot.slane %v649_v47, 4 }
 0x2a2   :  { %v651_v32 = vadd.f32 %v650_v51, %v649_v47 }
 0x2a4   :  { %v652_v52 = vrot.slane %v651_v32, 2 }
 0x2a6   :  { %v653_v53 = vadd.f32 %v652_v52, %v651_v32 }
 0x2a8   :  { %v654_v55 = vrot.slane %v653_v53, 1 }
 0x2aa   :  { %v655_v56 = vadd.f32 %v654_v55, %v653_v53 }
 0x2ac   :  { %767 = vpush %v655_v56 }
 0x2ad   :  { %769 = vpush %v667_v57 }
 0x2dd   :  { %s768_s23 = spop %767 }
 0x2de   :  { %658 = sst [smem:[#allocation3]] %s768_s23  ;;  %s770_s24 = spop %769 }
 0x2df   :  { %670 = sst [smem:[#allocation3 + $0x1]] %s770_s24 }
 0x2e0   :  { %815 = shalt.err (!%p812_p4)
}
 0x2e1   :  { %s830_s26 = smov [#allocation3]  }
 0x2e2   :  { %680 = dma.smem_to_vmem %s830_s26, 16, %s678_s22, [#allocation4]  }
 0x2e3   :  { %816 = dma.done.wait [#allocation4], 16  }
 0x2e4   :  { %817 = vsyncadd [#allocation4], 4294967280 }
 0x2e5   :  { %684 = sfence }
 0x2e6   :  { %685 = vsyncpa [#allocation4], 1 }

</bundles_post_ra>
